<compile_context>
chip_gen: v7x
topology: tpu7x:2x2x1
jax: 0.10.0
libtpu: 0.0.40
codegen_flags: <defaults>
</compile_context>

<pallas_src>
import functools

import jax
import jax.numpy as jnp
from jax.experimental import pallas as pl
from jax.experimental.pallas import tpu as pltpu


def _round_up(n, m):
    return ((n + m - 1) // m) * m


def _mlp_kernel(x_ref, w1_ref, b1_ref, w2_ref, b2_ref, w3_ref, b3_ref, o_ref):
    # Fused 3-layer MLP: matmuls on the MXU (f32 accumulate), bias + ReLU in f32
    # on the VPU, activations cast back to the matmul operand dtype between
    # layers (a no-op on the f32 path).
    x = x_ref[...]
    h1 = jnp.dot(x, w1_ref[...], preferred_element_type=jnp.float32) + b1_ref[...]
    h1 = jnp.maximum(h1, 0.0).astype(w2_ref.dtype)
    h2 = jnp.dot(h1, w2_ref[...], preferred_element_type=jnp.float32) + b2_ref[...]
    h2 = jnp.maximum(h2, 0.0).astype(w3_ref.dtype)
    out = jnp.dot(h2, w3_ref[...], preferred_element_type=jnp.float32) + b3_ref[...]
    o_ref[...] = out.astype(o_ref.dtype)


@functools.partial(jax.jit, static_argnames=("tile_m", "compute_dtype"))
def classifier_forward(x, params, *, tile_m=512, compute_dtype=jnp.float32):
    """Run the fused MLP.

    x: (B, inputdim) float32.
    params: dict with w1 (D,256), b1 (1,256), w2 (256,64), b2 (1,64),
            w3 (64,nlabel), b3 (1,nlabel). Weights stored as (in, out).
    compute_dtype: MXU operand dtype (jnp.float32 or jnp.bfloat16).
    """
    w1, b1, w2, b2, w3, b3 = (
        params["w1"], params["b1"], params["w2"],
        params["b2"], params["w3"], params["b3"],
    )
    B, D = x.shape
    H1 = w1.shape[1]            # 256 (already a multiple of 128)
    H2 = w2.shape[1]            # 64
    NL = w3.shape[1]            # nlabel

    # Lane-dense padding: hidden-2 and output columns padded to multiples of 128.
    # Zero pad-columns (and the matching zero rows of W3) contribute exactly 0,
    # so results are unchanged; output stores become unmasked full-width vst.
    H2P = _round_up(H2, 128)
    NLP = _round_up(NL, 128)

    cbytes = jnp.dtype(compute_dtype).itemsize

    # ---- static tile sizing (trace-time Python ints) -----------------------
    def vmem_estimate(tm):
        x_b = 2 * tm * D * cbytes                        # double-buffered x tile
        o_b = 2 * tm * NLP * 4                           # double-buffered out tile
        w_b = (D * H1 + H1 * H2P + H2P * NLP) * cbytes   # resident weights
        bias_b = (H1 + H2P + NLP) * 4
        act_b = 2 * tm * (H1 + H2P + NLP) * 4            # f32 intermediates + casts
        return x_b + o_b + w_b + bias_b + act_b

    tile = min(tile_m, _round_up(B, 8))
    budget = 48 * 1024 * 1024          # conservative vs. v7x 64 MiB physical VMEM
    while tile > 8 and vmem_estimate(tile) > budget:
        tile //= 2
    tile = max(8, (tile // 8) * 8)

    B_pad = _round_up(B, tile)
    grid = (B_pad // tile,)
    # TODO(synk): for very large inputdim (>8-16K) add a K-tiled grid axis with a
    # VMEM accumulator instead of keeping the whole (D, 256) W1 resident.

    # ---- pad / cast operands ------------------------------------------------
    xp = jnp.pad(x, ((0, B_pad - B), (0, 0))).astype(compute_dtype)
    w1c = w1.astype(compute_dtype)
    w2c = jnp.pad(w2, ((0, 0), (0, H2P - H2))).astype(compute_dtype)
    w3c = jnp.pad(w3, ((0, H2P - H2), (0, NLP - NL))).astype(compute_dtype)
    b1c = b1.astype(jnp.float32)
    b2c = jnp.pad(b2, ((0, 0), (0, H2P - H2))).astype(jnp.float32)
    b3c = jnp.pad(b3, ((0, 0), (0, NLP - NL))).astype(jnp.float32)

    in_specs = [
        pl.BlockSpec((tile, D), lambda i: (i, 0)),     # x tile (batch-tiled)
        pl.BlockSpec((D, H1), lambda i: (0, 0)),       # W1 (resident)
        pl.BlockSpec((1, H1), lambda i: (0, 0)),       # b1
        pl.BlockSpec((H1, H2P), lambda i: (0, 0)),     # W2
        pl.BlockSpec((1, H2P), lambda i: (0, 0)),      # b2
        pl.BlockSpec((H2P, NLP), lambda i: (0, 0)),    # W3
        pl.BlockSpec((1, NLP), lambda i: (0, 0)),      # b3
    ]
    out_specs = pl.BlockSpec((tile, NLP), lambda i: (i, 0))

    flops = 2 * B_pad * (D * H1 + H1 * H2P + H2P * NLP)
    bytes_accessed = (
        B_pad * D * cbytes
        + (D * H1 + H1 * H2P + H2P * NLP) * cbytes
        + (H1 + H2P + NLP) * 4
        + B_pad * NLP * 4
    )
    vmem_limit = int(min(max(2 * vmem_estimate(tile), 32 * 1024 * 1024),
                         56 * 1024 * 1024))

    out = pl.pallas_call(
        _mlp_kernel,
        out_shape=jax.ShapeDtypeStruct((B_pad, NLP), x.dtype),
        grid_spec=pltpu.PrefetchScalarGridSpec(
            num_scalar_prefetch=0,
            grid=grid,
            in_specs=in_specs,
            out_specs=out_specs,
        ),
        compiler_params=pltpu.CompilerParams(
            dimension_semantics=("parallel",),   # batch tiles shard across v7x TCs
            vmem_limit_bytes=vmem_limit,
        ),
        cost_estimate=pl.CostEstimate(
            flops=flops, transcendentals=0, bytes_accessed=bytes_accessed),
    )(xp, w1c, b1c, w2c, b2c, w3c, b3c)

    return out[:B, :NL]


def init_params(key, inputdim, nlabel):
    """Deterministic init mirroring PyTorch nn.Linear default (uniform +-1/sqrt(fan_in)).
    Weights stored as (in_features, out_features)."""
    ks = jax.random.split(key, 6)

    def linear(kw, kb, fan_in, fan_out):
        bound = 1.0 / jnp.sqrt(float(fan_in))
        w = jax.random.uniform(kw, (fan_in, fan_out), jnp.float32, -bound, bound)
        b = jax.random.uniform(kb, (1, fan_out), jnp.float32, -bound, bound)
        return w, b

    w1, b1 = linear(ks[0], ks[1], inputdim, 256)
    w2, b2 = linear(ks[2], ks[3], 256, 64)
    w3, b3 = linear(ks[4], ks[5], 64, nlabel)
    return {"w1": w1, "b1": b1, "w2": w2, "b2": b2, "w3": w3, "b3": b3}


def reference_forward(x, params):
    h1 = jnp.maximum(x @ params["w1"] + params["b1"], 0.0)
    h2 = jnp.maximum(h1 @ params["w2"] + params["b2"], 0.0)
    return h2 @ params["w3"] + params["b3"]


if __name__ == "__main__":
    inputdim = 32
    nlabel = 16

    key = jax.random.PRNGKey(0)
    kx, kp, kx2 = jax.random.split(key, 3)
    params = init_params(kp, inputdim, nlabel)

    # 1) Small-batch exact check (f32 MXU path; single grid step, padded lanes).
    x_small = jax.random.normal(kx, (8, inputdim), jnp.float32)
    out_small = jax.block_until_ready(classifier_forward(x_small, params))
    ref_small = reference_forward(x_small, params)
    assert out_small.shape == (8, nlabel)
    assert jnp.allclose(out_small, ref_small, atol=1e-4, rtol=1e-4), \
        "f32 path mismatch vs reference"

    # 2) Tiled check: batch 1024 -> 2 grid steps of tile 512 (both v7x TCs busy),
    #    bf16 MXU operands with f32 accumulate.
    x_big = jax.random.normal(kx2, (1024, inputdim), jnp.float32)
    out_big = jax.block_until_ready(
        classifier_forward(x_big, params, tile_m=512, compute_dtype=jnp.bfloat16))
    ref_big = reference_forward(x_big, params)
    assert out_big.shape == (1024, nlabel)
    max_err = float(jnp.max(jnp.abs(out_big - ref_big)))
    assert max_err < 5e-2, f"bf16 path mismatch: max abs err {max_err}"

    print("KERNEL_OK")
</pallas_src>

<mosaic_0001>
module attributes {stable_mosaic.version = 11 : i64} {
  func.func @_mlp_kernel(%arg0: i32, %arg1: memref<8x32xf32, #tpu.memory_space<vmem>>, %arg2: memref<32x256xf32, #tpu.memory_space<vmem>>, %arg3: memref<1x256xf32, #tpu.memory_space<vmem>>, %arg4: memref<256x128xf32, #tpu.memory_space<vmem>>, %arg5: memref<1x128xf32, #tpu.memory_space<vmem>>, %arg6: memref<128x128xf32, #tpu.memory_space<vmem>>, %arg7: memref<1x128xf32, #tpu.memory_space<vmem>>, %arg8: memref<8x128xf32, #tpu.memory_space<vmem>>) attributes {dimension_semantics = [#tpu.dimension_semantics<parallel>], iteration_bounds = array<i64: 1>, scalar_prefetch = 0 : i64, scratch_operands = 0 : i64, tpu.core_type = #tpu.core_type<tc>, window_params = [{transform_indices = @transform_0, window_bounds = array<i64: 8, 32>}, {pipeline_mode = #tpu.pipeline_mode<synchronous>, transform_indices = @transform_1, window_bounds = array<i64: 32, 256>}, {pipeline_mode = #tpu.pipeline_mode<synchronous>, transform_indices = @transform_2, window_bounds = array<i64: 1, 256>}, {pipeline_mode = #tpu.pipeline_mode<synchronous>, transform_indices = @transform_3, window_bounds = array<i64: 256, 128>}, {pipeline_mode = #tpu.pipeline_mode<synchronous>, transform_indices = @transform_4, window_bounds = array<i64: 1, 128>}, {pipeline_mode = #tpu.pipeline_mode<synchronous>, transform_indices = @transform_5, window_bounds = array<i64: 128, 128>}, {pipeline_mode = #tpu.pipeline_mode<synchronous>, transform_indices = @transform_6, window_bounds = array<i64: 1, 128>}, {transform_indices = @transform_7, window_bounds = array<i64: 8, 128>}]} {
    %c0 = arith.constant 0 : index
    %c0_0 = arith.constant 0 : index
    %0 = vector.load %arg1[%c0, %c0_0] : memref<8x32xf32, #tpu.memory_space<vmem>>, vector<8x32xf32>
    %c0_1 = arith.constant 0 : index
    %c0_2 = arith.constant 0 : index
    %1 = vector.load %arg2[%c0_1, %c0_2] : memref<32x256xf32, #tpu.memory_space<vmem>>, vector<32x256xf32>
    %cst = arith.constant dense<0.000000e+00> : vector<8x256xf32>
    %2 = tpu.matmul %0, %1, %cst {dimension_numbers = #tpu.dot_dimension_numbers<[1], [0], [0], [1], [0, 0, 1, 1], [], []>} : vector<8x32xf32>, vector<32x256xf32>, vector<8x256xf32> -> vector<8x256xf32>
    %c0_3 = arith.constant 0 : index
    %c0_4 = arith.constant 0 : index
    %3 = vector.load %arg3[%c0_3, %c0_4] : memref<1x256xf32, #tpu.memory_space<vmem>>, vector<1x256xf32>
    %4 = vector.broadcast %3 : vector<1x256xf32> to vector<8x256xf32>
    %5 = arith.addf %2, %4 : vector<8x256xf32>
    %cst_5 = arith.constant 0.000000e+00 : f32
    %6 = vector.broadcast %cst_5 : f32 to vector<8x256xf32>
    %7 = arith.maximumf %5, %6 : vector<8x256xf32>
    %c0_6 = arith.constant 0 : index
    %c0_7 = arith.constant 0 : index
    %8 = vector.load %arg4[%c0_6, %c0_7] : memref<256x128xf32, #tpu.memory_space<vmem>>, vector<256x128xf32>
    %cst_8 = arith.constant dense<0.000000e+00> : vector<8x128xf32>
    %9 = tpu.matmul %7, %8, %cst_8 {dimension_numbers = #tpu.dot_dimension_numbers<[1], [0], [0], [1], [0, 0, 1, 1], [], []>} : vector<8x256xf32>, vector<256x128xf32>, vector<8x128xf32> -> vector<8x128xf32>
    %c0_9 = arith.constant 0 : index
    %c0_10 = arith.constant 0 : index
    %10 = vector.load %arg5[%c0_9, %c0_10] : memref<1x128xf32, #tpu.memory_space<vmem>>, vector<1x128xf32>
    %11 = vector.broadcast %10 : vector<1x128xf32> to vector<8x128xf32>
    %12 = arith.addf %9, %11 : vector<8x128xf32>
    %cst_11 = arith.constant 0.000000e+00 : f32
    %13 = vector.broadcast %cst_11 : f32 to vector<8x128xf32>
    %14 = arith.maximumf %12, %13 : vector<8x128xf32>
    %c0_12 = arith.constant 0 : index
    %c0_13 = arith.constant 0 : index
    %15 = vector.load %arg6[%c0_12, %c0_13] : memref<128x128xf32, #tpu.memory_space<vmem>>, vector<128x128xf32>
    %cst_14 = arith.constant dense<0.000000e+00> : vector<8x128xf32>
    %16 = tpu.matmul %14, %15, %cst_14 {dimension_numbers = #tpu.dot_dimension_numbers<[1], [0], [0], [1], [0, 0, 1, 1], [], []>} : vector<8x128xf32>, vector<128x128xf32>, vector<8x128xf32> -> vector<8x128xf32>
    %c0_15 = arith.constant 0 : index
    %c0_16 = arith.constant 0 : index
    %17 = vector.load %arg7[%c0_15, %c0_16] : memref<1x128xf32, #tpu.memory_space<vmem>>, vector<1x128xf32>
    %18 = vector.broadcast %17 : vector<1x128xf32> to vector<8x128xf32>
    %19 = arith.addf %16, %18 : vector<8x128xf32>
    %c0_17 = arith.constant 0 : index
    %c0_18 = arith.constant 0 : index
    %20 = vector.load %arg8[%c0_17, %c0_18] : memref<8x128xf32, #tpu.memory_space<vmem>>, vector<8x128xf32>
    tpu.vector_store %arg8[%c0_17, %c0_18], %19 {strides = array<i32>} : memref<8x128xf32, #tpu.memory_space<vmem>>, vector<8x128xf32>,
    return
  }
  func.func @transform_0(%arg0: i32) -> (i32, i32) {
    %c0_i32 = arith.constant 0 : i32
    %c0_i32_0 = arith.constant 0 : i32
    return %arg0, %c0_i32 : i32, i32
  }
  func.func @transform_1(%arg0: i32) -> (i32, i32) {
    %c0_i32 = arith.constant 0 : i32
    %c0_i32_0 = arith.constant 0 : i32
    %c0_i32_1 = arith.constant 0 : i32
    return %c0_i32, %c0_i32_0 : i32, i32
  }
  func.func @transform_2(%arg0: i32) -> (i32, i32) {
    %c0_i32 = arith.constant 0 : i32
    %c0_i32_0 = arith.constant 0 : i32
    %c0_i32_1 = arith.constant 0 : i32
    return %c0_i32, %c0_i32_0 : i32, i32
  }
  func.func @transform_3(%arg0: i32) -> (i32, i32) {
    %c0_i32 = arith.constant 0 : i32
    %c0_i32_0 = arith.constant 0 : i32
    %c0_i32_1 = arith.constant 0 : i32
    return %c0_i32, %c0_i32_0 : i32, i32
  }
  func.func @transform_4(%arg0: i32) -> (i32, i32) {
    %c0_i32 = arith.constant 0 : i32
    %c0_i32_0 = arith.constant 0 : i32
    %c0_i32_1 = arith.constant 0 : i32
    return %c0_i32, %c0_i32_0 : i32, i32
  }
  func.func @transform_5(%arg0: i32) -> (i32, i32) {
    %c0_i32 = arith.constant 0 : i32
    %c0_i32_0 = arith.constant 0 : i32
    %c0_i32_1 = arith.constant 0 : i32
    return %c0_i32, %c0_i32_0 : i32, i32
  }
  func.func @transform_6(%arg0: i32) -> (i32, i32) {
    %c0_i32 = arith.constant 0 : i32
    %c0_i32_0 = arith.constant 0 : i32
    %c0_i32_1 = arith.constant 0 : i32
    return %c0_i32, %c0_i32_0 : i32, i32
  }
  func.func @transform_7(%arg0: i32) -> (i32, i32) {
    %c0_i32 = arith.constant 0 : i32
    %c0_i32_0 = arith.constant 0 : i32
    return %arg0, %c0_i32 : i32, i32
  }
}

</mosaic_0001>

<bundles_post_ra>
// kernel: classifier_forward.1
= control target key start
LH: loop header
LB: loop body
LE: loop exit
PB: predicated region body
PF: predicated region fallthrough
CT: control target
= control target key end

     0   :  { %v525_v7 = vmov 0.0   ;;  %vm48_vm0 = vcmask 261120   ;;  %s763_s0 = inlined_call_operand.vmem [shape: f32[8,32], index: 0, kind: input, shape index: {}]   ;;  %s764_s1 = inlined_call_operand.vmem [shape: f32[32,256], index: 1, kind: input, shape index: {}]   ;;  %s765_s2 = inlined_call_operand.vmem [shape: f32[1,256], index: 2, kind: input, shape index: {}]   ;;  %s766_s3 = inlined_call_operand.vmem [shape: f32[256,128], index: 3, kind: input, shape index: {}]   ;;  %s767_s4 = inlined_call_operand.vmem [shape: f32[1,128], index: 4, kind: input, shape index: {}]   ;;  %s768_s5 = inlined_call_operand.vmem [shape: f32[128,128], index: 5, kind: input, shape index: {}]   ;;  %s769_s6 = inlined_call_operand.vmem [shape: f32[1,128], index: 6, kind: input, shape index: {}]   ;;  %s770_s7 = inlined_call_operand.hbm [shape: f32[8,128], index: 7, kind: output, shape index: {}]  }
   0x1   :  { %v29_v0 = vld [vmem:[%s764_s1 + $0x8] sm:$0xff]  ;;  %v31_v1 = vld [vmem:[%s764_s1 + $0x18] sm:$0xff]  ;;  %v28_v2 = vld [vmem:[%s764_s1] sm:$0xff]  ;;  %116 = vmatprep.mubr.f32.mxu0 %v525_v7 }
   0x2   :  { %v433_v3 = vpack.c.bf16 %v31_v1, %v29_v0  ;;  %v30_v4 = vld [vmem:[%s764_s1 + $0x10] sm:$0xff]  ;;  %v33_v5 = vld [vmem:[%s764_s1 + $0x28] sm:$0xff]  ;;  %v35_v6 = vld [vmem:[%s764_s1 + $0x38] sm:$0xff] }
   0x3   :  { %v435_v8 = vpack.c.bf16 %v30_v4, %v28_v2  ;;  %v437_v9 = vpack.c.bf16 %v35_v6, %v33_v5  ;;  %v32_v10 = vld [vmem:[%s764_s1 + $0x20] sm:$0xff]  ;;  %v34_v11 = vld [vmem:[%s764_s1 + $0x30] sm:$0xff]  ;;  %v142_v13 = vld [vmem:[%s766_s3 + $0x88] sm:$0xff] }
   0x4   :  { %434 = vmatprep.subr.bf16.mxu0 %v433_v3  ;;  %v141_v12 = vld [vmem:[%s766_s3 + $0x80] sm:$0xff]  ;;  %v439_v15 = vpack.c.bf16 %v34_v11, %v32_v10  ;;  %v126_v17 = vld [vmem:[%s766_s3 + $0x8] sm:$0xff]  ;;  %v143_v18 = vld [vmem:[%s766_s3 + $0x90] sm:$0xff] }
   0x5   :  { %v125_v14 = vld [vmem:[%s766_s3] sm:$0xff]  ;;  %436 = vmatpush1.bf16.msra.mxu0 %v435_v8  ;;  %v441_v16 = vpack.c.bf16 %v142_v13, %v141_v12  ;;  %v144_v19 = vld [vmem:[%s766_s3 + $0x98] sm:$0xff]  ;;  %v127_v22 = vld [vmem:[%s766_s3 + $0x10] sm:$0xff] }
   0x6   :  { %438 = vmatprep.subr.bf16.mxu0 %v437_v9  ;;  %v443_v20 = vpack.c.bf16 %v126_v17, %v125_v14  ;;  %v445_v21 = vpack.c.bf16 %v144_v19, %v143_v18  ;;  %v128_v23 = vld [vmem:[%s766_s3 + $0x18] sm:$0xff]  ;;  %v145_v24 = vld [vmem:[%s766_s3 + $0xa0] sm:$0xff]  ;;  %v146_v25 = vld [vmem:[%s766_s3 + $0xa8] sm:$0xff] }
   0x7   :  { %442 = vmatprep.subr.bf16.mxu1 %v441_v16  ;;  %v447_v26 = vpack.c.bf16 %v128_v23, %v127_v22  ;;  %v27_v27 = vld [vmem:[%s763_s0] sm:$0xff]  ;;  %v449_v28 = vpack.c.bf16 %v146_v25, %v145_v24  ;;  %v130_v30 = vld [vmem:[%s766_s3 + $0x28] sm:$0xff]  ;;  %v147_v31 = vld [vmem:[%s766_s3 + $0xb0] sm:$0xff] }
   0x8   :  { %444 = vmatpush3.bf16.msra.mxu1 %v443_v20  ;;  %v129_v29 = vld [vmem:[%s766_s3 + $0x20] sm:$0xff]  ;;  %v148_v32 = vld [vmem:[%s766_s3 + $0xb8] sm:$0xff]  ;;  %v131_v35 = vld [vmem:[%s766_s3 + $0x30] sm:$0xff] }
   0x9   :  { %440 = vmatpush1.bf16.msra.mxu0 %v439_v15  ;;  %446 = vmatprep.subr.bf16.mxu1 %v445_v21  ;;  %v451_v33 = vpack.c.bf16 %v130_v30, %v129_v29  ;;  %v453_v34 = vpack.c.bf16 %v148_v32, %v147_v31  ;;  %v132_v36 = vld [vmem:[%s766_s3 + $0x38] sm:$0xff] }
   0xc   :  { %343 = vmatmul.mubr.msk.f32.vlgmr.msra.gmra.mrb[0].mxu0 %vm48_vm0, %v27_v27  ;;  %448 = vmatpush3.bf16.msra.mxu1 %v447_v26 }
   0xd   :  { %450 = vmatprep.subr.bf16.mxu1 %v449_v28 }
   0xe   :  { %12 = vsyncpa [#allocation3], 0  ;;  %v149_v37 = vld [vmem:[%s766_s3 + $0xc0] sm:$0xff]  ;;  %v150_v38 = vld [vmem:[%s766_s3 + $0xc8] sm:$0xff]  ;;  %v455_v39 = vpack.c.bf16 %v132_v36, %v131_v35  ;;  %v526_v1 = vmov 0.0|0.0   ;;  %v38_v18 = vlaneseq  ;;  %vm527_vm1 = vmmov 0  }
   0xf   :  { %v457_v40 = vpack.c.bf16 %v150_v38, %v149_v37  ;;  %v133_v41 = vld [vmem:[%s766_s3 + $0x40] sm:$0xff]  ;;  %v134_v42 = vld [vmem:[%s766_s3 + $0x48] sm:$0xff]  ;;  %v151_v43 = vld [vmem:[%s766_s3 + $0xd0] sm:$0xff]  ;;  %473 = vmatprep.subr.bf16.mxu0 %v526_v1  ;;  %430 = vmatprep.mubr.msk.f32.mxu0 %vm527_vm1, %v525_v7 }
  0x10   :  { %452 = vmatpush3.bf16.msra.mxu1 %v451_v33  ;;  %v152_v44 = vld [vmem:[%s766_s3 + $0xd8] sm:$0xff]  ;;  %v459_v45 = vpack.c.bf16 %v134_v42, %v133_v41  ;;  %v135_v47 = vld [vmem:[%s766_s3 + $0x50] sm:$0xff]  ;;  %v153_v49 = vld [vmem:[%s766_s3 + $0xe0] sm:$0xff]  ;;  %v39_v19 = vshrl.u32 %v38_v18, 7 }
  0x11   :  { %454 = vmatprep.subr.bf16.mxu1 %v453_v34  ;;  %v461_v46 = vpack.c.bf16 %v152_v44, %v151_v43  ;;  %v136_v48 = vld [vmem:[%s766_s3 + $0x58] sm:$0xff]  ;;  %v154_v50 = vld [vmem:[%s766_s3 + $0xe8] sm:$0xff]  ;;  %v137_v53 = vld [vmem:[%s766_s3 + $0x60] sm:$0xff] }
  0x12   :  { %v463_v51 = vpack.c.bf16 %v136_v48, %v135_v47  ;;  %v465_v52 = vpack.c.bf16 %v154_v50, %v153_v49  ;;  %v138_v54 = vld [vmem:[%s766_s3 + $0x68] sm:$0xff]  ;;  %v155_v56 = vld [vmem:[%s766_s3 + $0xf0] sm:$0xff]  ;;  %v156_v57 = vld [vmem:[%s766_s3 + $0xf8] sm:$0xff]  ;;  %v40_v20 = vsub.s32 0, %v39_v19  ;;  %v44_v22 = vsub.s32 1, %v39_v19 }
  0x13   :  { %v467_v55 = vpack.c.bf16 %v138_v54, %v137_v53  ;;  %v469_v58 = vpack.c.bf16 %v156_v57, %v155_v56  ;;  %v139_v59 = vld [vmem:[%s766_s3 + $0x70] sm:$0xff]  ;;  %v140_v60 = vld [vmem:[%s766_s3 + $0x78] sm:$0xff]  ;;  %v235_v62 = vld [vmem:[%s768_s5] sm:$0xff] }
  0x14   :  { %456 = vmatpush3.bf16.msra.mxu1 %v455_v39  ;;  %v471_v61 = vpack.c.bf16 %v140_v60, %v139_v59  ;;  %v236_v63 = vld [vmem:[%s768_s5 + $0x8] sm:$0xff]  ;;  %v237_v0 = vld [vmem:[%s768_s5 + $0x10] sm:$0xff]  ;;  %v238_v3 = vld [vmem:[%s768_s5 + $0x18] sm:$0xff] }
  0x15   :  { %458 = vmatprep.subr.bf16.mxu1 %v457_v40  ;;  %v474_v2 = vpack.c.bf16 %v236_v63, %v235_v62  ;;  %v477_v4 = vpack.c.bf16 %v238_v3, %v237_v0  ;;  %v239_v5 = vld [vmem:[%s768_s5 + $0x20] sm:$0xff]  ;;  %v240_v6 = vld [vmem:[%s768_s5 + $0x28] sm:$0xff]  ;;  %v241_v9 = vld [vmem:[%s768_s5 + $0x30] sm:$0xff] }
  0x16   :  { %v480_v8 = vpack.c.bf16 %v240_v6, %v239_v5  ;;  %v242_v10 = vld [vmem:[%s768_s5 + $0x38] sm:$0xff]  ;;  %v243_v12 = vld [vmem:[%s768_s5 + $0x40] sm:$0xff]  ;;  %v244_v13 = vld [vmem:[%s768_s5 + $0x48] sm:$0xff] }
  0x17   :  { %475 = vmatpush3.bf16.msra.mxu0 %v474_v2  ;;  %v483_v11 = vpack.c.bf16 %v242_v10, %v241_v9  ;;  %v486_v14 = vpack.c.bf16 %v244_v13, %v243_v12  ;;  %v245_v15 = vld [vmem:[%s768_s5 + $0x50] sm:$0xff]  ;;  %v246_v16 = vld [vmem:[%s768_s5 + $0x58] sm:$0xff]  ;;  %v36_v21 = vld [vmem:[%s765_s2] sm:$0x3] }
  0x18   :  { %460 = vmatpush3.bf16.msra.mxu1 %v459_v45  ;;  %476 = vmatprep.subr.bf16.mxu0 %v526_v1  ;;  %v489_v17 = vpack.c.bf16 %v246_v16, %v245_v15  ;;  %v41_v23 = vrot.slane %v36_v21, %v40_v20  ;;  %v45_v24 = vrot.slane %v36_v21, %v44_v22  ;;  %v247_v31 = vld [vmem:[%s768_s5 + $0x60] sm:$0xff]  ;;  %v248_v32 = vld [vmem:[%s768_s5 + $0x68] sm:$0xff]  ;;  %v249_v34 = vld [vmem:[%s768_s5 + $0x70] sm:$0xff] }
  0x19   :  { %462 = vmatprep.subr.bf16.mxu1 %v461_v46  ;;  %v492_v33 = vpack.c.bf16 %v248_v32, %v247_v31  ;;  %v250_v35 = vld [vmem:[%s768_s5 + $0x78] sm:$0xff]  ;;  %v344_v38 = vld [vmem:[%s767_s4] ss:$0 sm:$0xff]  ;;  %s528_s5 = smov [#allocation2]  }
  0x1a   :  { %v495_v36 = vpack.c.bf16 %v250_v35, %v249_v34  ;;  %v345_v43 = vld [vmem:[%s769_s6] ss:$0 sm:$0xff]  ;;  %s335_s19 = sshll.u32 %s528_s5, 4  ;;  %s336_s19 = int_to_ptr.vmem [resolvable:$true] %s335_s19 }
  0x1b   :  { %478 = vmatpush3.bf16.msra.mxu0 %v477_v4  ;;  %s501_s20 = scalar_lea.vmem %s336_s19, 128  ;;  %p506_p1 = scmp.lt.s32.totalorder %s336_s19, %s336_s19 }
  0x1c   :  { %464 = vmatpush3.bf16.msra.mxu1 %v463_v51  ;;  %479 = vmatprep.subr.bf16.mxu0 %v526_v1  ;;  %p502_p0 = scmp.ne.s32.totalorder %s336_s19, %s501_s20  ;;  %p507_p2 = scmp.lt.s32.totalorder %s501_s20, %s501_s20 }
  0x1d   :  { %466 = vmatprep.subr.bf16.mxu1 %v465_v52 }
  0x1e   :  { %p508_p3 = por %p507_p2, %p506_p1 }
  0x1f   :  { %481 = vmatpush3.bf16.msra.mxu0 %v480_v8 }
  0x20   :  { %468 = vmatpush3.bf16.msra.mxu1 %v467_v55  ;;  %482 = vmatprep.subr.bf16.mxu0 %v526_v1  ;;  %p509_p4 = pnand %p508_p3, %p502_p0 }
  0x21   :  { %470 = vmatprep.subr.bf16.mxu1 %v469_v58 }
  0x23   :  { %484 = vmatpush3.bf16.msra.mxu0 %v483_v11 }
  0x24   :  { %472 = vmatpush3.bf16.msra.mxu1 %v471_v61  ;;  %485 = vmatprep.subr.bf16.mxu0 %v526_v1 }
  0x27   :  { %487 = vmatpush3.bf16.msra.mxu0 %v486_v14 }
  0x28   :  { %488 = vmatprep.subr.bf16.mxu0 %v526_v1 }
  0x2b   :  { %490 = vmatpush3.bf16.msra.mxu0 %v489_v17 }
  0x2c   :  { %491 = vmatprep.subr.bf16.mxu0 %v526_v1 }
  0x2f   :  { %493 = vmatpush3.bf16.msra.mxu0 %v492_v33 }
  0x30   :  { %494 = vmatprep.subr.bf16.mxu0 %v526_v1 }
  0x33   :  { %496 = vmatpush3.bf16.msra.mxu0 %v495_v36 }
  0xdf   :  { %v118_v25 = vpop.f32.mrb[0].mxu0 }
  0xe0   :  { %v119_v26 = vadd.f32 %v118_v25, %v41_v23  ;;  %v120_v27 = vpop.f32.mrb[1].mxu0 }
  0xe1   :  { %v121_v28 = vadd.f32 %v120_v27, %v45_v24 }
  0xe2   :  { %v123_v30 = vmax.f32 %v119_v26, 0.0 }
  0xe3   :  { %v124_v29 = vmax.f32 %v121_v28, 0.0 }
  0xe5   :  { %228 = vmatprep.mubr.f32.mxu1 %v124_v29 }
  0xe6   :  { %229 = vmatmul.mubr.f32.vlgmr.msra.gmra.mrb[0].mxu1 %v123_v30 }
 0x1b9   :  { %v378_v37 = vpop.f32.mrb[0].mxu1 }
 0x1ba   :  { %v379_v39 = vpop.f32.mrb[1].mxu1 }
 0x1bb   :  { %v380_v40 = vadd.f32 %v379_v39, %v378_v37 }
 0x1bd   :  { %v231_v41 = vadd.f32 %v380_v40, %v344_v38 }
 0x1bf   :  { %v234_v42 = vmax.f32 %v231_v41, 0.0 }
 0x1c1   :  { %431 = vmatmul.mubr.f32.vlgmr.msra.gmra.mrb[2].mxu0 %v234_v42 }
 0x294   :  { %v324_v44 = vpop.f32.mrb[2].mxu0 }
 0x295   :  { %v325_v45 = vadd.f32 %v345_v43, %v324_v44  ;;  %v432_v46 = vpop.f32.mrb[3].mxu0 }
 0x297   :  { %328 = vst [vmem:[#allocation2] sm:$0xff] %v325_v45 }
 0x298   :  { %512 = shalt.err (!%p509_p4)
}
 0x299   :  { %s513_s22 = scalar_lea.hbm %s770_s7, 128 }
 0x29a   :  { %p514_p5 = scmp.ne.s32.totalorder %s770_s7, %s513_s22  ;;  %p517_p6 = scmp.lt.u32.totalorder %s513_s22, %s770_s7 }
 0x29c   :  { %p519_p7 = pnand %p517_p6, %p514_p5 }
 0x29e   :  { %522 = shalt.err (!%p519_p7)
}
 0x29f   :  { %338 = dma.vmem_to_hbm [thread:$0]  %s336_s19, 128, %s770_s7, [#allocation3]  }
 0x2a0   :  { %523 = dma.done.wait [#allocation3], 128  }
 0x2a1   :  { %524 = vsyncadd [#allocation3], 4294967168 }
 0x2a2   :  { %342 = vsyncpa [#allocation3], 1 }

</bundles_post_ra>
